<compile_context>
chip_gen: v6e
topology: v6e:2x2x1
jax: 0.10.0
libtpu: 0.0.40
codegen_flags: <defaults>
</compile_context>

<pallas_src>
import functools

import jax
import jax.numpy as jnp
from jax.experimental import pallas as pl
from jax.experimental.pallas import tpu as pltpu


# ----------------------------- in-kernel helpers ----------------------------


def _sigmoid_fast(x):
    # exp on the EUP; approximate reciprocal also on the EUP -> frees VALU slots
    return pl.reciprocal(1.0 + jnp.exp(-x), approx=True)


def _sigmoid_exact(x):
    # exact sigmoid for the reconstructions (they may feed a training loss)
    return 1.0 / (1.0 + jnp.exp(-x))


# ----------------------------- Pallas kernel --------------------------------


def _estimator_kernel(adj_n_ref, adj_r_ref, opt_n_ref, opt_r_ref, p_ref,
                      *out_refs, offs, autoencoding):
    """Fused extractor(normal) + extractor(reduce) + predictor.

    p_ref is a (rows, 128) f32 parameter slab; `offs[name] = (row, nrows,
    ncols)` carves each weight/bias out with static (zero-cost) ref slices.
    """
    if autoencoding:
        (opt_rec_n_ref, opt_rec_r_ref, adj_rec_n_ref, adj_rec_r_ref,
         z_ref, y_ref) = out_refs
    else:
        z_ref, y_ref = out_refs

    f32 = jnp.float32
    bf16 = jnp.bfloat16

    def rd(name):
        r, nr, nc = offs[name]
        return p_ref[r:r + nr, 0:nc]          # static slice -> cheap sub-load

    # encoder / predictor weights (bf16 MXU operands, f32 biases & accumulation)
    w1 = rd("w1").astype(bf16)                # (D, H)
    w2 = rd("w2").astype(bf16)                # (H, L)
    b1 = rd("b1")                             # (1, H)
    b2 = rd("b2")                             # (1, L)
    wf1 = rd("wf1")                           # (2L, H)   tiny -> keep f32
    bf1 = rd("bf1")                           # (1, H)
    wf2t = rd("wf2t")                         # (1, H)    wf2 stored transposed
    bf2 = rd("bf2")                           # (1, 1)

    def encode(adj, opt):
        # h1 = relu(adj @ (opt @ W1) + b1) ; z = adj @ (h1 @ W2) + b2
        B, N, D = opt.shape
        H = w1.shape[1]
        L = w2.shape[1]
        adj_b = adj.astype(bf16)              # 0/1 entries -> exact cast
        xw1 = jnp.dot(opt.reshape(B * N, D).astype(bf16), w1,
                      preferred_element_type=f32).reshape(B, N, H)
        h1 = jnp.maximum(
            jnp.einsum('bnm,bmh->bnh', adj_b, xw1.astype(bf16),
                       preferred_element_type=f32) + b1, 0.0)
        hw2 = jnp.dot(h1.reshape(B * N, H).astype(bf16), w2,
                      preferred_element_type=f32).reshape(B, N, L)
        z = jnp.einsum('bnm,bml->bnl', adj_b, hw2.astype(bf16),
                       preferred_element_type=f32) + b2
        return z

    z_n = encode(adj_n_ref[...], opt_n_ref[...])      # (B, N, L)
    z_r = encode(adj_r_ref[...], opt_r_ref[...])      # (B, N, L)

    if autoencoding:
        wdec = rd("wdec").astype(bf16)        # (L, D)
        bdec = rd("bdec")                     # (1, D)

        def decode(z, opt_rec_ref, adj_rec_ref):
            B, N, L = z.shape
            D = wdec.shape[1]
            z_b = z.astype(bf16)
            # adj_recon = sigmoid(z @ z.T): the transpose is absorbed into the
            # MXU operand feed by the contraction pattern.
            # TODO(synk): per perf review, confirm via pl.lower_as_mlir on
            # v6e/v7x that no per-batch XLU vxpose is emitted; if it is, switch
            # to one flattened (B*N,L)@(L,B*N) gram + block-diag VPU mask.
            logits = jnp.einsum('bnl,bml->bnm', z_b, z_b,
                                preferred_element_type=f32)
            adj_rec_ref[...] = _sigmoid_exact(logits)
            opt_rec_ref[...] = (jnp.dot(z.reshape(B * N, L).astype(bf16), wdec,
                                        preferred_element_type=f32)
                                .reshape(B, N, D) + bdec)

        decode(z_n, opt_rec_n_ref, adj_rec_n_ref)
        decode(z_r, opt_rec_r_ref, adj_rec_r_ref)

    # z = cat(z_normal, z_reduce, dim=-1): single full-width store.
    z_ref[...] = jnp.concatenate([z_n, z_r], axis=-1)

    # predictor: mean pool over nodes, 2-layer MLP, sigmoid.  The latent concat
    # is folded into the first matmul by splitting Wf1 along its input dim.
    L = z_n.shape[-1]
    pooled_n = jnp.mean(z_n, axis=1)          # (B, L)
    pooled_r = jnp.mean(z_r, axis=1)          # (B, L)
    h = jnp.maximum(
        jnp.dot(pooled_n, wf1[0:L], preferred_element_type=f32) +
        jnp.dot(pooled_r, wf1[L:2 * L], preferred_element_type=f32) + bf1, 0.0)
    logit = jnp.sum(h * wf2t, axis=-1, keepdims=True) + bf2   # (B, 1)
    y_ref[...] = _sigmoid_fast(logit)


# ----------------------------- wrapper ---------------------------------------


_VMEM = pl.BlockSpec(memory_space=pltpu.MemorySpace.VMEM)   # whole array in VMEM


@functools.partial(jax.jit, static_argnames=("offs", "autoencoding"))
def estimator_forward(opt_pair, adj_pair, param_slab, *, offs,
                      autoencoding=True):
    """Mirrors Estimator.forward (GCN-AE extractor + MLP predictor)."""
    opt_n, opt_r = opt_pair
    adj_n, adj_r = adj_pair
    B, N, D = opt_n.shape
    offs_d = dict(offs)
    L = offs_d["w2"][2]                      # latent width

    kern = functools.partial(_estimator_kernel, offs=offs_d,
                             autoencoding=autoencoding)

    # NOTE(v7x): keep the single grid-less launch at B=2.  If the stacked
    # batch ever scales (>= ~8 graphs) add a leading "parallel" grid axis over
    # batch so both TensorCores run the encoder/decoder, and budget the recon
    # outputs against the 32 MiB scoped-VMEM default (64 MiB physical).
    if autoencoding:
        out_shape = (
            jax.ShapeDtypeStruct((B, N, D), jnp.float32),        # opt_recon_n
            jax.ShapeDtypeStruct((B, N, D), jnp.float32),        # opt_recon_r
            jax.ShapeDtypeStruct((B, N, N), jnp.float32),        # adj_recon_n
            jax.ShapeDtypeStruct((B, N, N), jnp.float32),        # adj_recon_r
            jax.ShapeDtypeStruct((B, N, 2 * L), jnp.float32),    # z (cat)
            jax.ShapeDtypeStruct((B, 1), jnp.float32),           # y
        )
        (o_rn, o_rr, a_rn, a_rr, z, y) = pl.pallas_call(
            kern, in_specs=[_VMEM] * 5, out_specs=(_VMEM,) * 6,
            out_shape=out_shape,
        )(adj_n, adj_r, opt_n, opt_r, param_slab)
        return ((o_rn, o_rr), (a_rn, a_rr), z, y)
    else:
        out_shape = (
            jax.ShapeDtypeStruct((B, N, 2 * L), jnp.float32),    # z (cat)
            jax.ShapeDtypeStruct((B, 1), jnp.float32),           # y
        )
        z, y = pl.pallas_call(
            kern, in_specs=[_VMEM] * 5, out_specs=(_VMEM,) * 2,
            out_shape=out_shape,
        )(adj_n, adj_r, opt_n, opt_r, param_slab)
        return (z, y)


# ----------------------------- parameter setup -------------------------------


def make_params(key, d_op, hidden, latent):
    ks = jax.random.split(key, 8)
    scale = 0.1
    ext = {
        "w1":   scale * jax.random.normal(ks[0], (d_op, hidden), jnp.float32),
        "b1":   jnp.zeros((1, hidden), jnp.float32),
        "w2":   scale * jax.random.normal(ks[1], (hidden, latent), jnp.float32),
        "b2":   jnp.zeros((1, latent), jnp.float32),
        "wdec": scale * jax.random.normal(ks[2], (latent, d_op), jnp.float32),
        "bdec": jnp.zeros((1, d_op), jnp.float32),
    }
    pred = {
        "wf1": scale * jax.random.normal(ks[3], (2 * latent, hidden), jnp.float32),
        "bf1": jnp.zeros((1, hidden), jnp.float32),
        "wf2": scale * jax.random.normal(ks[4], (hidden, 1), jnp.float32),
        "bf2": jnp.zeros((1, 1), jnp.float32),
    }
    return ext, pred


def pack_params(ext, pred):
    """Pack all weights/biases into one lane-aligned (rows, 128) f32 slab.

    Done once OUTSIDE jit -> the per-call wrapper does no packing work and the
    kernel sees a single VMEM input instead of 12.
    Returns (slab, offs) where offs is a hashable tuple of (name, (row, nrows,
    ncols)) usable as a static jit argument.
    """
    pieces = [
        ("w1", ext["w1"]), ("b1", ext["b1"]),
        ("w2", ext["w2"]), ("b2", ext["b2"]),
        ("wdec", ext["wdec"]), ("bdec", ext["bdec"]),
        ("wf1", pred["wf1"]), ("bf1", pred["bf1"]),
        ("wf2t", pred["wf2"].T), ("bf2", pred["bf2"]),
    ]
    offs = {}
    rows = []
    r = 0
    for name, a in pieces:
        a = jnp.asarray(a, jnp.float32)
        assert a.ndim == 2 and a.shape[1] <= 128
        offs[name] = (r, int(a.shape[0]), int(a.shape[1]))
        rows.append(jnp.pad(a, ((0, 0), (0, 128 - a.shape[1]))))
        r += int(a.shape[0])
    pad = (-r) % 8
    if pad:
        rows.append(jnp.zeros((pad, 128), jnp.float32))
    slab = jnp.concatenate(rows, axis=0)          # (96, 128) at default sizes
    return slab, tuple(sorted(offs.items()))


# ----------------------------- main ------------------------------------------


if __name__ == "__main__":
    B, N, D_OP, HIDDEN, LATENT = 2, 8, 8, 32, 16

    key = jax.random.PRNGKey(0)
    k_opt_n, k_opt_r, k_adj_n, k_adj_r, k_par = jax.random.split(key, 5)

    # one-hot op matrices and upper-triangular DAG adjacencies
    opt_normal = jax.nn.one_hot(
        jax.random.randint(k_opt_n, (B, N), 0, D_OP), D_OP, dtype=jnp.float32)
    opt_reduce = jax.nn.one_hot(
        jax.random.randint(k_opt_r, (B, N), 0, D_OP), D_OP, dtype=jnp.float32)
    tri = jnp.triu(jnp.ones((N, N), jnp.float32), k=1)
    adj_normal = (jax.random.bernoulli(k_adj_n, 0.5, (B, N, N))
                  .astype(jnp.float32) * tri)
    adj_reduce = (jax.random.bernoulli(k_adj_r, 0.5, (B, N, N))
                  .astype(jnp.float32) * tri)

    ext_params, pred_params = make_params(k_par, D_OP, HIDDEN, LATENT)
    param_slab, offs = pack_params(ext_params, pred_params)   # once, outside jit

    # autoencoding=True path (single fused kernel launch, 5 input DMAs)
    (opt_recons, adj_recons, z, y) = estimator_forward(
        (opt_normal, opt_reduce), (adj_normal, adj_reduce),
        param_slab, offs=offs, autoencoding=True)
    jax.block_until_ready((opt_recons, adj_recons, z, y))

    assert opt_recons[0].shape == (B, N, D_OP)
    assert opt_recons[1].shape == (B, N, D_OP)
    assert adj_recons[0].shape == (B, N, N)
    assert adj_recons[1].shape == (B, N, N)
    assert z.shape == (B, N, 2 * LATENT)
    assert y.shape == (B, 1)

    # autoencoding=False path (decoder matmuls and recon writebacks skipped)
    z2, y2 = estimator_forward(
        (opt_normal, opt_reduce), (adj_normal, adj_reduce),
        param_slab, offs=offs, autoencoding=False)
    jax.block_until_ready((z2, y2))
    assert z2.shape == (B, N, 2 * LATENT) and y2.shape == (B, 1)

    # numerical sanity check against a pure-f32 JAX reference (loose tolerance:
    # bf16 MXU operands + approx-reciprocal sigmoid on the y head)
    def _ref_encode(opt, adj, ext):
        h1 = jnp.maximum(adj @ (opt @ ext["w1"]) + ext["b1"], 0.0)
        return adj @ (h1 @ ext["w2"]) + ext["b2"]

    z_n_ref = _ref_encode(opt_normal, adj_normal, ext_params)
    z_r_ref = _ref_encode(opt_reduce, adj_reduce, ext_params)
    z_expect = jnp.concatenate((z_n_ref, z_r_ref), axis=-1)
    pooled = z_expect.mean(axis=1)
    h_ref = jnp.maximum(pooled @ pred_params["wf1"] + pred_params["bf1"], 0.0)
    y_expect = jax.nn.sigmoid(h_ref @ pred_params["wf2"] + pred_params["bf2"])
    adj_rec_n_expect = jax.nn.sigmoid(
        jnp.einsum('bnl,bml->bnm', z_n_ref, z_n_ref))
    opt_rec_n_expect = z_n_ref @ ext_params["wdec"] + ext_params["bdec"]

    assert jnp.allclose(z, z_expect, atol=2e-2, rtol=2e-2), "z mismatch"
    assert jnp.allclose(y, y_expect, atol=2e-2, rtol=2e-2), "y mismatch"
    assert jnp.allclose(adj_recons[0], adj_rec_n_expect, atol=2e-2), \
        "adj_recon mismatch"
    assert jnp.allclose(opt_recons[0], opt_rec_n_expect, atol=2e-2), \
        "opt_recon mismatch"
    assert jnp.allclose(z2, z, atol=1e-6), "z (no-AE) mismatch"
    assert jnp.allclose(y2, y, atol=1e-6), "y (no-AE) mismatch"

    print("KERNEL_OK")
</pallas_src>

<mosaic_0001>
module attributes {stable_mosaic.version = 11 : i64} {
  func.func @_estimator_kernel(%arg0: memref<2x8x8xf32, #tpu.memory_space<vmem>>, %arg1: memref<2x8x8xf32, #tpu.memory_space<vmem>>, %arg2: memref<2x8x8xf32, #tpu.memory_space<vmem>>, %arg3: memref<2x8x8xf32, #tpu.memory_space<vmem>>, %arg4: memref<96x128xf32, #tpu.memory_space<vmem>>, %arg5: memref<2x8x8xf32, #tpu.memory_space<vmem>>, %arg6: memref<2x8x8xf32, #tpu.memory_space<vmem>>, %arg7: memref<2x8x8xf32, #tpu.memory_space<vmem>>, %arg8: memref<2x8x8xf32, #tpu.memory_space<vmem>>, %arg9: memref<2x8x32xf32, #tpu.memory_space<vmem>>, %arg10: memref<2x1xf32, #tpu.memory_space<vmem>>) attributes {dimension_semantics = [], scalar_prefetch = 0 : i64, scratch_operands = 0 : i64, tpu.core_type = #tpu.core_type<tc>} {
    %c0 = arith.constant 0 : index
    %c0_0 = arith.constant 0 : index
    %0 = vector.load %arg4[%c0, %c0_0] : memref<96x128xf32, #tpu.memory_space<vmem>>, vector<8x32xf32>
    %1 = arith.truncf %0 : vector<8x32xf32> to vector<8x32xbf16>
    %c9 = arith.constant 9 : index
    %c0_1 = arith.constant 0 : index
    %2 = vector.load %arg4[%c9, %c0_1] : memref<96x128xf32, #tpu.memory_space<vmem>>, vector<32x16xf32>
    %3 = arith.truncf %2 : vector<32x16xf32> to vector<32x16xbf16>
    %c8 = arith.constant 8 : index
    %c0_2 = arith.constant 0 : index
    %4 = vector.load %arg4[%c8, %c0_2] : memref<96x128xf32, #tpu.memory_space<vmem>>, vector<1x32xf32>
    %c41 = arith.constant 41 : index
    %c0_3 = arith.constant 0 : index
    %5 = vector.load %arg4[%c41, %c0_3] : memref<96x128xf32, #tpu.memory_space<vmem>>, vector<1x16xf32>
    %c59 = arith.constant 59 : index
    %c0_4 = arith.constant 0 : index
    %6 = vector.load %arg4[%c59, %c0_4] : memref<96x128xf32, #tpu.memory_space<vmem>>, vector<32x32xf32>
    %c91 = arith.constant 91 : index
    %c0_5 = arith.constant 0 : index
    %7 = vector.load %arg4[%c91, %c0_5] : memref<96x128xf32, #tpu.memory_space<vmem>>, vector<1x32xf32>
    %c92 = arith.constant 92 : index
    %c0_6 = arith.constant 0 : index
    %8 = vector.load %arg4[%c92, %c0_6] : memref<96x128xf32, #tpu.memory_space<vmem>>, vector<1x32xf32>
    %c93 = arith.constant 93 : index
    %c0_7 = arith.constant 0 : index
    %9 = vector.load %arg4[%c93, %c0_7] : memref<96x128xf32, #tpu.memory_space<vmem>>, vector<1x1xf32>
    %c0_8 = arith.constant 0 : index
    %c0_9 = arith.constant 0 : index
    %c0_10 = arith.constant 0 : index
    %10 = vector.load %arg0[%c0_8, %c0_9, %c0_10] : memref<2x8x8xf32, #tpu.memory_space<vmem>>, vector<2x8x8xf32>
    %c0_11 = arith.constant 0 : index
    %c0_12 = arith.constant 0 : index
    %c0_13 = arith.constant 0 : index
    %11 = vector.load %arg2[%c0_11, %c0_12, %c0_13] : memref<2x8x8xf32, #tpu.memory_space<vmem>>, vector<2x8x8xf32>
    %12 = arith.truncf %10 : vector<2x8x8xf32> to vector<2x8x8xbf16>
    %13 = vector.shape_cast %11 : vector<2x8x8xf32> to vector<16x8xf32>
    %14 = arith.truncf %13 : vector<16x8xf32> to vector<16x8xbf16>
    %cst = arith.constant dense<0.000000e+00> : vector<16x32xf32>
    %15 = tpu.matmul %14, %1, %cst {dimension_numbers = #tpu.dot_dimension_numbers<[1], [0], [0], [1], [0, 0, 1, 1], [], []>} : vector<16x8xbf16>, vector<8x32xbf16>, vector<16x32xf32> -> vector<16x32xf32>
    %16 = vector.shape_cast %15 : vector<16x32xf32> to vector<2x8x32xf32>
    %17 = arith.truncf %16 : vector<2x8x32xf32> to vector<2x8x32xbf16>
    "tpu.trace_start"() <{level = 10 : i32, message = "bnm,bmh->bnh"}> : () -> ()
    %cst_14 = arith.constant dense<0.000000e+00> : vector<2x8x32xf32>
    %18 = tpu.matmul %12, %17, %cst_14 {dimension_numbers = #tpu.dot_dimension_numbers<[2], [1], [1], [2], [0, 0, 0, 1, 1, 2], [0], [0]>} : vector<2x8x8xbf16>, vector<2x8x32xbf16>, vector<2x8x32xf32> -> vector<2x8x32xf32>
    "tpu.trace_stop"() : () -> ()
    %19 = vector.shape_cast %4 : vector<1x32xf32> to vector<1x1x32xf32>
    %20 = vector.broadcast %19 : vector<1x1x32xf32> to vector<2x8x32xf32>
    %21 = arith.addf %18, %20 : vector<2x8x32xf32>
    %cst_15 = arith.constant 0.000000e+00 : f32
    %22 = vector.broadcast %cst_15 : f32 to vector<2x8x32xf32>
    %23 = arith.maximumf %21, %22 : vector<2x8x32xf32>
    %24 = vector.shape_cast %23 : vector<2x8x32xf32> to vector<16x32xf32>
    %25 = arith.truncf %24 : vector<16x32xf32> to vector<16x32xbf16>
    %cst_16 = arith.constant dense<0.000000e+00> : vector<16x16xf32>
    %26 = tpu.matmul %25, %3, %cst_16 {dimension_numbers = #tpu.dot_dimension_numbers<[1], [0], [0], [1], [0, 0, 1, 1], [], []>} : vector<16x32xbf16>, vector<32x16xbf16>, vector<16x16xf32> -> vector<16x16xf32>
    %27 = vector.shape_cast %26 : vector<16x16xf32> to vector<2x8x16xf32>
    %28 = arith.truncf %27 : vector<2x8x16xf32> to vector<2x8x16xbf16>
    "tpu.trace_start"() <{level = 10 : i32, message = "bnm,bml->bnl"}> : () -> ()
    %cst_17 = arith.constant dense<0.000000e+00> : vector<2x8x16xf32>
    %29 = tpu.matmul %12, %28, %cst_17 {dimension_numbers = #tpu.dot_dimension_numbers<[2], [1], [1], [2], [0, 0, 0, 1, 1, 2], [0], [0]>} : vector<2x8x8xbf16>, vector<2x8x16xbf16>, vector<2x8x16xf32> -> vector<2x8x16xf32>
    "tpu.trace_stop"() : () -> ()
    %30 = vector.shape_cast %5 : vector<1x16xf32> to vector<1x1x16xf32>
    %31 = vector.broadcast %30 : vector<1x1x16xf32> to vector<2x8x16xf32>
    %32 = arith.addf %29, %31 : vector<2x8x16xf32>
    %c0_18 = arith.constant 0 : index
    %c0_19 = arith.constant 0 : index
    %c0_20 = arith.constant 0 : index
    %33 = vector.load %arg1[%c0_18, %c0_19, %c0_20] : memref<2x8x8xf32, #tpu.memory_space<vmem>>, vector<2x8x8xf32>
    %c0_21 = arith.constant 0 : index
    %c0_22 = arith.constant 0 : index
    %c0_23 = arith.constant 0 : index
    %34 = vector.load %arg3[%c0_21, %c0_22, %c0_23] : memref<2x8x8xf32, #tpu.memory_space<vmem>>, vector<2x8x8xf32>
    %35 = arith.truncf %33 : vector<2x8x8xf32> to vector<2x8x8xbf16>
    %36 = vector.shape_cast %34 : vector<2x8x8xf32> to vector<16x8xf32>
    %37 = arith.truncf %36 : vector<16x8xf32> to vector<16x8xbf16>
    %cst_24 = arith.constant dense<0.000000e+00> : vector<16x32xf32>
    %38 = tpu.matmul %37, %1, %cst_24 {dimension_numbers = #tpu.dot_dimension_numbers<[1], [0], [0], [1], [0, 0, 1, 1], [], []>} : vector<16x8xbf16>, vector<8x32xbf16>, vector<16x32xf32> -> vector<16x32xf32>
    %39 = vector.shape_cast %38 : vector<16x32xf32> to vector<2x8x32xf32>
    %40 = arith.truncf %39 : vector<2x8x32xf32> to vector<2x8x32xbf16>
    "tpu.trace_start"() <{level = 10 : i32, message = "bnm,bmh->bnh"}> : () -> ()
    %cst_25 = arith.constant dense<0.000000e+00> : vector<2x8x32xf32>
    %41 = tpu.matmul %35, %40, %cst_25 {dimension_numbers = #tpu.dot_dimension_numbers<[2], [1], [1], [2], [0, 0, 0, 1, 1, 2], [0], [0]>} : vector<2x8x8xbf16>, vector<2x8x32xbf16>, vector<2x8x32xf32> -> vector<2x8x32xf32>
    "tpu.trace_stop"() : () -> ()
    %42 = vector.shape_cast %4 : vector<1x32xf32> to vector<1x1x32xf32>
    %43 = vector.broadcast %42 : vector<1x1x32xf32> to vector<2x8x32xf32>
    %44 = arith.addf %41, %43 : vector<2x8x32xf32>
    %cst_26 = arith.constant 0.000000e+00 : f32
    %45 = vector.broadcast %cst_26 : f32 to vector<2x8x32xf32>
    %46 = arith.maximumf %44, %45 : vector<2x8x32xf32>
    %47 = vector.shape_cast %46 : vector<2x8x32xf32> to vector<16x32xf32>
    %48 = arith.truncf %47 : vector<16x32xf32> to vector<16x32xbf16>
    %cst_27 = arith.constant dense<0.000000e+00> : vector<16x16xf32>
    %49 = tpu.matmul %48, %3, %cst_27 {dimension_numbers = #tpu.dot_dimension_numbers<[1], [0], [0], [1], [0, 0, 1, 1], [], []>} : vector<16x32xbf16>, vector<32x16xbf16>, vector<16x16xf32> -> vector<16x16xf32>
    %50 = vector.shape_cast %49 : vector<16x16xf32> to vector<2x8x16xf32>
    %51 = arith.truncf %50 : vector<2x8x16xf32> to vector<2x8x16xbf16>
    "tpu.trace_start"() <{level = 10 : i32, message = "bnm,bml->bnl"}> : () -> ()
    %cst_28 = arith.constant dense<0.000000e+00> : vector<2x8x16xf32>
    %52 = tpu.matmul %35, %51, %cst_28 {dimension_numbers = #tpu.dot_dimension_numbers<[2], [1], [1], [2], [0, 0, 0, 1, 1, 2], [0], [0]>} : vector<2x8x8xbf16>, vector<2x8x16xbf16>, vector<2x8x16xf32> -> vector<2x8x16xf32>
    "tpu.trace_stop"() : () -> ()
    %53 = vector.shape_cast %5 : vector<1x16xf32> to vector<1x1x16xf32>
    %54 = vector.broadcast %53 : vector<1x1x16xf32> to vector<2x8x16xf32>
    %55 = arith.addf %52, %54 : vector<2x8x16xf32>
    %c42 = arith.constant 42 : index
    %c0_29 = arith.constant 0 : index
    %56 = vector.load %arg4[%c42, %c0_29] : memref<96x128xf32, #tpu.memory_space<vmem>>, vector<16x8xf32>
    %57 = arith.truncf %56 : vector<16x8xf32> to vector<16x8xbf16>
    %c58 = arith.constant 58 : index
    %c0_30 = arith.constant 0 : index
    %58 = vector.load %arg4[%c58, %c0_30] : memref<96x128xf32, #tpu.memory_space<vmem>>, vector<1x8xf32>
    %59 = arith.truncf %32 : vector<2x8x16xf32> to vector<2x8x16xbf16>
    "tpu.trace_start"() <{level = 10 : i32, message = "bnl,bml->bnm"}> : () -> ()
    %cst_31 = arith.constant dense<0.000000e+00> : vector<2x8x8xf32>
    %60 = tpu.matmul %59, %59, %cst_31 {dimension_numbers = #tpu.dot_dimension_numbers<[2], [2], [1], [1], [0, 0, 0, 1, 1, 1], [0], [0]>} : vector<2x8x16xbf16>, vector<2x8x16xbf16>, vector<2x8x8xf32> -> vector<2x8x8xf32>
    "tpu.trace_stop"() : () -> ()
    %cst_32 = arith.constant 0.000000e+00 : f32
    %61 = vector.broadcast %cst_32 : f32 to vector<2x8x8xf32>
    %62 = arith.subf %61, %60 : vector<2x8x8xf32>
    %63 = math.exp %62 : vector<2x8x8xf32>
    %cst_33 = arith.constant 1.000000e+00 : f32
    %64 = vector.broadcast %cst_33 : f32 to vector<2x8x8xf32>
    %65 = arith.addf %64, %63 : vector<2x8x8xf32>
    %cst_34 = arith.constant 1.000000e+00 : f32
    %66 = vector.broadcast %cst_34 : f32 to vector<2x8x8xf32>
    %67 = arith.divf %66, %65 : vector<2x8x8xf32>
    %c0_35 = arith.constant 0 : index
    %c0_36 = arith.constant 0 : index
    %c0_37 = arith.constant 0 : index
    %68 = vector.load %arg7[%c0_35, %c0_36, %c0_37] : memref<2x8x8xf32, #tpu.memory_space<vmem>>, vector<2x8x8xf32>
    tpu.vector_store %arg7[%c0_35, %c0_36, %c0_37], %67 {strides = array<i32>} : memref<2x8x8xf32, #tpu.memory_space<vmem>>, vector<2x8x8xf32>,
    %69 = vector.shape_cast %32 : vector<2x8x16xf32> to vector<16x16xf32>
    %70 = arith.truncf %69 : vector<16x16xf32> to vector<16x16xbf16>
    %cst_38 = arith.constant dense<0.000000e+00> : vector<16x8xf32>
    %71 = tpu.matmul %70, %57, %cst_38 {dimension_numbers = #tpu.dot_dimension_numbers<[1], [0], [0], [1], [0, 0, 1, 1], [], []>} : vector<16x16xbf16>, vector<16x8xbf16>, vector<16x8xf32> -> vector<16x8xf32>
    %72 = vector.shape_cast %71 : vector<16x8xf32> to vector<2x8x8xf32>
    %73 = vector.shape_cast %58 : vector<1x8xf32> to vector<1x1x8xf32>
    %74 = vector.broadcast %73 : vector<1x1x8xf32> to vector<2x8x8xf32>
    %75 = arith.addf %72, %74 : vector<2x8x8xf32>
    %c0_39 = arith.constant 0 : index
    %c0_40 = arith.constant 0 : index
    %c0_41 = arith.constant 0 : index
    %76 = vector.load %arg5[%c0_39, %c0_40, %c0_41] : memref<2x8x8xf32, #tpu.memory_space<vmem>>, vector<2x8x8xf32>
    tpu.vector_store %arg5[%c0_39, %c0_40, %c0_41], %75 {strides = array<i32>} : memref<2x8x8xf32, #tpu.memory_space<vmem>>, vector<2x8x8xf32>,
    %77 = arith.truncf %55 : vector<2x8x16xf32> to vector<2x8x16xbf16>
    "tpu.trace_start"() <{level = 10 : i32, message = "bnl,bml->bnm"}> : () -> ()
    %cst_42 = arith.constant dense<0.000000e+00> : vector<2x8x8xf32>
    %78 = tpu.matmul %77, %77, %cst_42 {dimension_numbers = #tpu.dot_dimension_numbers<[2], [2], [1], [1], [0, 0, 0, 1, 1, 1], [0], [0]>} : vector<2x8x16xbf16>, vector<2x8x16xbf16>, vector<2x8x8xf32> -> vector<2x8x8xf32>
    "tpu.trace_stop"() : () -> ()
    %cst_43 = arith.constant 0.000000e+00 : f32
    %79 = vector.broadcast %cst_43 : f32 to vector<2x8x8xf32>
    %80 = arith.subf %79, %78 : vector<2x8x8xf32>
    %81 = math.exp %80 : vector<2x8x8xf32>
    %cst_44 = arith.constant 1.000000e+00 : f32
    %82 = vector.broadcast %cst_44 : f32 to vector<2x8x8xf32>
    %83 = arith.addf %82, %81 : vector<2x8x8xf32>
    %cst_45 = arith.constant 1.000000e+00 : f32
    %84 = vector.broadcast %cst_45 : f32 to vector<2x8x8xf32>
    %85 = arith.divf %84, %83 : vector<2x8x8xf32>
    %c0_46 = arith.constant 0 : index
    %c0_47 = arith.constant 0 : index
    %c0_48 = arith.constant 0 : index
    %86 = vector.load %arg8[%c0_46, %c0_47, %c0_48] : memref<2x8x8xf32, #tpu.memory_space<vmem>>, vector<2x8x8xf32>
    tpu.vector_store %arg8[%c0_46, %c0_47, %c0_48], %85 {strides = array<i32>} : memref<2x8x8xf32, #tpu.memory_space<vmem>>, vector<2x8x8xf32>,
    %87 = vector.shape_cast %55 : vector<2x8x16xf32> to vector<16x16xf32>
    %88 = arith.truncf %87 : vector<16x16xf32> to vector<16x16xbf16>
    %cst_49 = arith.constant dense<0.000000e+00> : vector<16x8xf32>
    %89 = tpu.matmul %88, %57, %cst_49 {dimension_numbers = #tpu.dot_dimension_numbers<[1], [0], [0], [1], [0, 0, 1, 1], [], []>} : vector<16x16xbf16>, vector<16x8xbf16>, vector<16x8xf32> -> vector<16x8xf32>
    %90 = vector.shape_cast %89 : vector<16x8xf32> to vector<2x8x8xf32>
    %91 = vector.shape_cast %58 : vector<1x8xf32> to vector<1x1x8xf32>
    %92 = vector.broadcast %91 : vector<1x1x8xf32> to vector<2x8x8xf32>
    %93 = arith.addf %90, %92 : vector<2x8x8xf32>
    %c0_50 = arith.constant 0 : index
    %c0_51 = arith.constant 0 : index
    %c0_52 = arith.constant 0 : index
    %94 = vector.load %arg6[%c0_50, %c0_51, %c0_52] : memref<2x8x8xf32, #tpu.memory_space<vmem>>, vector<2x8x8xf32>
    tpu.vector_store %arg6[%c0_50, %c0_51, %c0_52], %93 {strides = array<i32>} : memref<2x8x8xf32, #tpu.memory_space<vmem>>, vector<2x8x8xf32>,
    %95 = tpu.concatenate %32, %55 in 2 : vector<2x8x16xf32>, vector<2x8x16xf32> -> vector<2x8x32xf32>
    %c0_53 = arith.constant 0 : index
    %c0_54 = arith.constant 0 : index
    %c0_55 = arith.constant 0 : index
    %96 = vector.load %arg9[%c0_53, %c0_54, %c0_55] : memref<2x8x32xf32, #tpu.memory_space<vmem>>, vector<2x8x32xf32>
    tpu.vector_store %arg9[%c0_53, %c0_54, %c0_55], %95 {strides = array<i32>} : memref<2x8x32xf32, #tpu.memory_space<vmem>>, vector<2x8x32xf32>,
    %cst_56 = arith.constant dense<0.000000e+00> : vector<2x16xf32>
    %97 = vector.multi_reduction <add>, %32, %cst_56 [1] : vector<2x8x16xf32> to vector<2x16xf32>
    %cst_57 = arith.constant 8.000000e+00 : f32
    %98 = vector.broadcast %cst_57 : f32 to vector<2x16xf32>
    %99 = arith.divf %97, %98 : vector<2x16xf32>
    %cst_58 = arith.constant dense<0.000000e+00> : vector<2x16xf32>
    %100 = vector.multi_reduction <add>, %55, %cst_58 [1] : vector<2x8x16xf32> to vector<2x16xf32>
    %cst_59 = arith.constant 8.000000e+00 : f32
    %101 = vector.broadcast %cst_59 : f32 to vector<2x16xf32>
    %102 = arith.divf %100, %101 : vector<2x16xf32>
    %103 = vector.extract_strided_slice %6 {offsets = [0, 0], sizes = [16, 32], strides = [1, 1]} : vector<32x32xf32> to vector<16x32xf32>
    %cst_60 = arith.constant dense<0.000000e+00> : vector<2x32xf32>
    %104 = tpu.matmul %99, %103, %cst_60 {dimension_numbers = #tpu.dot_dimension_numbers<[1], [0], [0], [1], [0, 0, 1, 1], [], []>} : vector<2x16xf32>, vector<16x32xf32>, vector<2x32xf32> -> vector<2x32xf32>
    %105 = vector.extract_strided_slice %6 {offsets = [16, 0], sizes = [16, 32], strides = [1, 1]} : vector<32x32xf32> to vector<16x32xf32>
    %cst_61 = arith.constant dense<0.000000e+00> : vector<2x32xf32>
    %106 = tpu.matmul %102, %105, %cst_61 {dimension_numbers = #tpu.dot_dimension_numbers<[1], [0], [0], [1], [0, 0, 1, 1], [], []>} : vector<2x16xf32>, vector<16x32xf32>, vector<2x32xf32> -> vector<2x32xf32>
    %107 = arith.addf %104, %106 : vector<2x32xf32>
    %108 = vector.broadcast %7 : vector<1x32xf32> to vector<2x32xf32>
    %109 = arith.addf %107, %108 : vector<2x32xf32>
    %cst_62 = arith.constant 0.000000e+00 : f32
    %110 = vector.broadcast %cst_62 : f32 to vector<2x32xf32>
    %111 = arith.maximumf %109, %110 : vector<2x32xf32>
    %112 = vector.broadcast %8 : vector<1x32xf32> to vector<2x32xf32>
    %113 = arith.mulf %111, %112 : vector<2x32xf32>
    %cst_63 = arith.constant dense<0.000000e+00> : vector<2xf32>
    %114 = vector.multi_reduction <add>, %113, %cst_63 [1] : vector<2x32xf32> to vector<2xf32>
    %115 = vector.shape_cast %114 : vector<2xf32> to vector<2x1xf32>
    %116 = vector.broadcast %9 : vector<1x1xf32> to vector<2x1xf32>
    %117 = arith.addf %115, %116 : vector<2x1xf32>
    %cst_64 = arith.constant 0.000000e+00 : f32
    %118 = vector.broadcast %cst_64 : f32 to vector<2x1xf32>
    %119 = arith.subf %118, %117 : vector<2x1xf32>
    %120 = math.exp %119 : vector<2x1xf32>
    %cst_65 = arith.constant 1.000000e+00 : f32
    %121 = vector.broadcast %cst_65 : f32 to vector<2x1xf32>
    %122 = arith.addf %121, %120 : vector<2x1xf32>
    %123 = tpu.reciprocal %122 {approx = true} : vector<2x1xf32> -> vector<2x1xf32>
    %c0_66 = arith.constant 0 : index
    %c0_67 = arith.constant 0 : index
    %124 = vector.load %arg10[%c0_66, %c0_67] : memref<2x1xf32, #tpu.memory_space<vmem>>, vector<2x1xf32>
    tpu.vector_store %arg10[%c0_66, %c0_67], %123 {strides = array<i32>} : memref<2x1xf32, #tpu.memory_space<vmem>>, vector<2x1xf32>,
    return
  }
}

</mosaic_0001>

<bundles_post_ra>
// kernel: estimator_forward.1
= control target key start
LH: loop header
LB: loop body
LE: loop exit
PB: predicated region body
PF: predicated region fallthrough
CT: control target
= control target key end

     0   :  { %16 = vsyncpa [#allocation3], 0  ;;  %s2051_s0 = inlined_call_operand.hbm [shape: f32[2,8,8], index: 0, kind: input, shape index: {}]   ;;  %s2052_s1 = inlined_call_operand.hbm [shape: f32[2,8,8], index: 1, kind: input, shape index: {}]   ;;  %s2053_s2 = inlined_call_operand.hbm [shape: f32[2,8,8], index: 2, kind: input, shape index: {}]   ;;  %s2054_s3 = inlined_call_operand.hbm [shape: f32[2,8,8], index: 3, kind: input, shape index: {}]   ;;  %s2055_s4 = inlined_call_operand.hbm [shape: f32[96,128], index: 4, kind: input, shape index: {}]   ;;  %s2056_s5 = inlined_call_operand.hbm [shape: f32[2,8,8], index: 5, kind: output, shape index: {0}]   ;;  %s2057_s6 = inlined_call_operand.hbm [shape: f32[2,8,8], index: 6, kind: output, shape index: {1}]   ;;  %s2058_s7 = inlined_call_operand.hbm [shape: f32[2,8,8], index: 7, kind: output, shape index: {2}]   ;;  %s2059_s8 = inlined_call_operand.hbm [shape: f32[2,8,8], index: 8, kind: output, shape index: {3}]   ;;  %s2060_s9 = inlined_call_operand.hbm [shape: f32[2,8,32], index: 9, kind: output, shape index: {4}]   ;;  %s2061_s10 = inlined_call_operand.vmem [shape: f32[2,1], index: 10, kind: output, shape index: {5}]  }
   0x1   :  { %17 = vsyncpa [#allocation6], 0 }
   0x2   :  { %18 = vsyncpa [#allocation9], 0 }
   0x3   :  { %19 = vsyncpa [#allocation4], 0 }
   0x4   :  { %20 = vsyncpa [#allocation13], 0 }
   0x5   :  { %21 = vsyncpa [#allocation16], 0  ;;  %s1751_s13 = smov [#allocation5]   ;;  %s1752_s15 = smov [#allocation8]  }
   0x6   :  { %s39_s14 = sshll.u32 %s1751_s13, 4  ;;  %s63_s16 = sshll.u32 %s1752_s15, 4  ;;  %s40_s14 = int_to_ptr.vmem [resolvable:$true] %s39_s14  ;;  %s64_s16 = int_to_ptr.vmem [resolvable:$true] %s63_s16 }
   0x7   :  { %s1547_s17 = scalar_lea.vmem %s40_s14, 256  ;;  %p1552_p1 = scmp.lt.s32.totalorder %s40_s14, %s40_s14 }
   0x8   :  { %p1548_p0 = scmp.ne.s32.totalorder %s40_s14, %s1547_s17  ;;  %p1553_p2 = scmp.lt.s32.totalorder %s1547_s17, %s1547_s17 }
   0xa   :  { %p1554_p3 = por %p1553_p2, %p1552_p1 }
   0xc   :  { %p1555_p4 = pnand %p1554_p3, %p1548_p0 }
   0xe   :  { %1558 = shalt.err (!%p1555_p4)
}
   0xf   :  { %s1753_s18 = smov 128   ;;  %s1754_s19 = smov 8  }
  0x10   :  { %45 = dma.hbm_to_vmem [thread:$0]  %s2052_s1, 256, %s40_s14, [#allocation6], %s1753_s18, %s1753_s18, %s1754_s19  }
  0x11   :  { %s1567_s22 = scalar_lea.vmem %s64_s16, 256  ;;  %p1572_p6 = scmp.lt.s32.totalorder %s64_s16, %s64_s16 }
  0x12   :  { %p1568_p5 = scmp.ne.s32.totalorder %s64_s16, %s1567_s22  ;;  %p1573_p7 = scmp.lt.s32.totalorder %s1567_s22, %s1567_s22 }
  0x14   :  { %p1574_p8 = por %p1573_p7, %p1572_p6 }
  0x16   :  { %p1575_p9 = pnand %p1574_p8, %p1568_p5 }
  0x18   :  { %1578 = shalt.err (!%p1575_p9)
}
  0x19   :  { %69 = dma.hbm_to_vmem [thread:$0]  %s2054_s3, 256, %s64_s16, [#allocation9], %s1753_s18, %s1753_s18, %s1754_s19  }
  0x1a   :  { %s1755_s25 = smov [#allocation2]   ;;  %s1756_s27 = smov [#allocation7]  }
  0x1b   :  { %s27_s26 = sshll.u32 %s1755_s25, 4  ;;  %s51_s28 = sshll.u32 %s1756_s27, 4  ;;  %s28_s26 = int_to_ptr.vmem [resolvable:$true] %s27_s26  ;;  %s52_s28 = int_to_ptr.vmem [resolvable:$true] %s51_s28 }
  0x1c   :  { %s1587_s1 = scalar_lea.vmem %s28_s26, 256  ;;  %p1592_p11 = scmp.lt.s32.totalorder %s28_s26, %s28_s26 }
  0x1d   :  { %p1588_p10 = scmp.ne.s32.totalorder %s28_s26, %s1587_s1  ;;  %p1593_p12 = scmp.lt.s32.totalorder %s1587_s1, %s1587_s1 }
  0x1f   :  { %p1594_p13 = por %p1593_p12, %p1592_p11 }
  0x21   :  { %p1595_p0 = pnand %p1594_p13, %p1588_p10 }
  0x23   :  { %1598 = shalt.err (!%p1595_p0)
}
  0x24   :  { %33 = dma.hbm_to_vmem [thread:$0]  %s2051_s0, 256, %s28_s26, [#allocation3], %s1753_s18, %s1753_s18, %s1754_s19  }
  0x25   :  { %s1607_s3 = scalar_lea.vmem %s52_s28, 256  ;;  %p1612_p2 = scmp.lt.s32.totalorder %s52_s28, %s52_s28 }
  0x26   :  { %p1608_p1 = scmp.ne.s32.totalorder %s52_s28, %s1607_s3  ;;  %p1613_p3 = scmp.lt.s32.totalorder %s1607_s3, %s1607_s3 }
  0x28   :  { %p1614_p4 = por %p1613_p3, %p1612_p2 }
  0x2a   :  { %p1615_p5 = pnand %p1614_p4, %p1608_p1 }
  0x2c   :  { %1618 = shalt.err (!%p1615_p5)
}
  0x2d   :  { %57 = dma.hbm_to_vmem [thread:$0]  %s2053_s2, 256, %s52_s28, [#allocation6], %s1753_s18, %s1753_s18, %s1754_s19  }
  0x2e   :  { %s1757_s13 = smov [#allocation10]  }
  0x2f   :  { %s75_s14 = sshll.u32 %s1757_s13, 4  ;;  %s76_s14 = int_to_ptr.vmem [resolvable:$true] %s75_s14 }
  0x30   :  { %s1627_s15 = scalar_lea.vmem %s76_s14, 1536  ;;  %p1632_p7 = scmp.lt.s32.totalorder %s76_s14, %s76_s14 }
  0x31   :  { %p1628_p6 = scmp.ne.s32.totalorder %s76_s14, %s1627_s15  ;;  %p1633_p8 = scmp.lt.s32.totalorder %s1627_s15, %s1627_s15 }
  0x33   :  { %p1634_p9 = por %p1633_p8, %p1632_p7 }
  0x35   :  { %p1635_p10 = pnand %p1634_p9, %p1628_p6 }
  0x37   :  { %1638 = shalt.err (!%p1635_p10)
}
  0x38   :  { %81 = dma.hbm_to_vmem [thread:$0]  %s2055_s4, 1536, %s76_s14, [#allocation9], %s1753_s18, %s1753_s18, %s1754_s19  }
  0x39   :  { %1739 = dma.done.wait [#allocation3], 256  }
  0x3a   :  { %1740 = vsyncadd [#allocation3], 4294967040 }
  0x3b   :  { %1741 = dma.done.wait [#allocation6], 512  }
  0x3c   :  { %1742 = vsyncadd [#allocation6], 4294966784 }
  0x3d   :  { %1743 = dma.done.wait [#allocation9], 1792  }
  0x3e   :  { %1744 = vsyncadd [#allocation9], 4294965504  ;;  %v1758_v0 = vmov 0.0   ;;  %vm1759_vm0 = vmmov 0   ;;  %v98_v1 = vld [vmem:[#allocation10] sm:$0xff]  ;;  %vm126_vm1 = vcmask 1043456  }
  0x3f   :  { %1378 = vmatprep.subr.bf16.mxu0 %v1758_v0  ;;  %1380 = vmatprep.mubr.msk.bf16.mxu0 %vm1759_vm0, %v1758_v0  ;;  %v117_v2 = vld [vmem:[#allocation7] sm:$0xff]  ;;  %v118_v3 = vld [vmem:[#allocation7 + $0x8] sm:$0xff]  ;;  %v99_v4 = vpack.c.bf16 %v98_v1, %v98_v1  ;;  %vm122_vm2 = vcmask 64512   ;;  %v101_v23 = vld [vmem:[#allocation10 + $0x11] sm:$0xff]  ;;  %vm272_vm3 = vcmask 261120   ;;  %vm695_vm4 = vcmask 130048  }
  0x40   :  { %1384 = vmatprep.subr.bf16.mxu1 %v1758_v0  ;;  %1386 = vmatprep.mubr.msk.bf16.mxu1 %vm1759_vm0, %v1758_v0  ;;  %v121_v6 = vpack.c.bf16 %v118_v3, %v117_v2  ;;  %v115_v8 = vld [vmem:[#allocation2] sm:$0xff]  ;;  %v116_v14 = vld [vmem:[#allocation2 + $0x8] sm:$0xff]  ;;  %v411_v47 = vld [vmem:[#allocation8] sm:$0xff]  ;;  %s1760_s2 = smov 16   ;;  %vm1047_vm5 = vcmask 1041409   ;;  %vm1207_vm6 = vcmask 254976  }
  0x41   :  { %v1858_v5 = vsel %vm126_vm1, %v99_v4, 0  ;;  %v119_v12 = vpack.c.bf16 %v115_v8, %v115_v8  ;;  %v120_v18 = vpack.c.bf16 %v116_v14, %v116_v14  ;;  %v102_v19 = vld [vmem:[#allocation10 + $0x19] sm:$0xff]  ;;  %v103_v20 = vld [vmem:[#allocation10 + $0x21] sm:$0xff]  ;;  %v100_v22 = vld [vmem:[#allocation10 + $0x9] sm:$0xff]  ;;  %s1761_s4 = smov [#allocation12]   ;;  %s1762_s20 = smov [#allocation15]  }
  0x42   :  { %1379 = vmatpush3.bf16.msra.mxu0 %v1858_v5  ;;  %v1875_v21 = vpack.c.bf16 %v103_v20, %v102_v19  ;;  %v1879_v24 = vpack.c.bf16 %v101_v23, %v100_v22  ;;  %v1883_v25 = vld [vmem:[#allocation10 + $0x8] ss:$0 sm:$0xff]  ;;  %v412_v48 = vld [vmem:[#allocation8 + $0x8] sm:$0xff]  ;;  %v409_v57 = vld [vmem:[#allocation5] sm:$0xff]  ;;  %s1240_s17 = sshll.u32 %s1761_s4, 4  ;;  %s1264_s21 = sshll.u32 %s1762_s20, 4  ;;  %s1241_s17 = int_to_ptr.vmem [resolvable:$true] %s1240_s17  ;;  %s1265_s21 = int_to_ptr.vmem [resolvable:$true] %s1264_s21 }
  0x43   :  { %1390 = vmatprep.subr.bf16.mxu0 %v1758_v0  ;;  %v415_v49 = vpack.c.bf16 %v412_v48, %v411_v47  ;;  %v413_v63 = vpack.c.bf16 %v409_v57, %v409_v57  ;;  %v410_v2 = vld [vmem:[#allocation5 + $0x8] sm:$0xff]  ;;  %v1313_v20 = vld [vmem:[#allocation10 + $0x29] ss:$0 sm:$0xff]  ;;  %s1639_s22 = scalar_lea.vmem %s1241_s17, 256  ;;  %p1644_p12 = scmp.lt.s32.totalorder %s1241_s17, %s1241_s17 }
  0x44   :  { %p1640_p11 = scmp.ne.s32.totalorder %s1241_s17, %s1639_s22  ;;  %p1645_p13 = scmp.lt.s32.totalorder %s1639_s22, %s1639_s22 }
  0x45   :  { %1381 = vmatmul.mubr.msk.bf16.vlgmr.msra.gmra.mxu0 %vm122_vm2, %v121_v6  ;;  %v414_v6 = vpack.c.bf16 %v410_v2, %v410_v2 }
  0x46   :  { %1392 = vmatprep.mubr.msk.bf16.mxu0 %vm1759_vm0, %v1758_v0  ;;  %p1646_p0 = por %p1645_p13, %p1644_p12 }
  0x48   :  { %p1647_p1 = pnand %p1646_p0, %p1640_p11 }
 0x105   :  { %v164_v7 = vpop.f32.mrf.mxu0 }
 0x106   :  { %v171_v9 = vpack.c.bf16 %v164_v7, %v164_v7 }
 0x107   :  { %v1382_v10 = vpop.f32.mrf.mxu0 }
 0x108   :  { %v181_v11 = vsel %vm126_vm1, %v171_v9, 0 }
 0x109   :  { %v167_v13 = vpop.f32.mrf.mxu0  ;;  %1385 = vmatpush3.bf16.msra.mxu1 %v181_v11 }
 0x10a   :  { %v172_v15 = vpack.c.bf16 %v167_v13, %v167_v13  ;;  %1396 = vmatprep.subr.bf16.mxu1 %v1758_v0 }
 0x10b   :  { %v1383_v16 = vpop.f32.mrf.mxu0 }
 0x10c   :  { %v227_v17 = vsel %vm126_vm1, %v172_v15, 0  ;;  %1387 = vmatmul.mubr.msk.bf16.vlgmr.msra.gmra.mxu1 %vm122_vm2, %v119_v12 }
 0x10d   :  { %1391 = vmatpush3.bf16.msra.mxu0 %v227_v17  ;;  %1400 = vmatprep.mubr.msk.bf16.mxu1 %vm1759_vm0, %v1758_v0 }
 0x10e   :  { %1404 = vmatprep.subr.bf16.mxu0 %v1758_v0  ;;  %1397 = vmatpush3.bf16.msra.mxu1 %v1875_v21 }
 0x10f   :  { %1398 = vmatprep.subr.bf16.mxu1 %v1758_v0 }
 0x110   :  { %1393 = vmatmul.mubr.msk.bf16.vlgmr.msra.gmra.mxu0 %vm122_vm2, %v120_v18 }
 0x111   :  { %1406 = vmatprep.mubr.msk.bf16.mxu0 %vm1759_vm0, %v1758_v0 }
 0x112   :  { %1399 = vmatpush3.bf16.msra.mxu1 %v1879_v24 }
 0x113   :  { %1410 = vmatprep.subr.bf16.mxu1 %v1758_v0 }
 0x1cc   :  { %v217_v26 = vpop.f32.mrf.mxu1 }
 0x1cd   :  { %v218_v27 = vadd.f32 %v1883_v25, %v217_v26 }
 0x1ce   :  { %v1388_v28 = vpop.f32.mrf.mxu1 }
 0x1cf   :  { %v269_v31 = vmax.f32 %v218_v27, 0.0 }
 0x1d0   :  { %v220_v29 = vpop.f32.mrf.mxu1  ;;  %v263_v30 = vpop.f32.mrf.mxu0 }
 0x1d1   :  { %v264_v32 = vadd.f32 %v1883_v25, %v263_v30 }
 0x1d2   :  { %v1389_v33 = vpop.f32.mrf.mxu1  ;;  %v1394_v34 = vpop.f32.mrf.mxu0 }
 0x1d3   :  { %v270_v35 = vmax.f32 %v264_v32, 0.0  ;;  %v689_v34 = vld [vmem:[#allocation10 + $0x2a] sm:$0xff] }
 0x1d4   :  { %v266_v36 = vpop.f32.mrf.mxu0 }
 0x1d5   :  { %v271_v37 = vpack.c.bf16 %v270_v35, %v269_v31  ;;  %v690_v35 = vld [vmem:[#allocation10 + $0x32] sm:$0xff] }
 0x1d6   :  { %v1395_v38 = vpop.f32.mrf.mxu0 }
 0x1d7   :  { %1401 = vmatmul.mubr.msk.bf16.vlgmr.msra.gmra.mxu1 %vm272_vm3, %v271_v37  ;;  %v691_v37 = vpack.c.bf16 %v690_v35, %v689_v34 }
 0x1d8   :  { %1412 = vmatprep.mubr.msk.bf16.mxu1 %vm1759_vm0, %v1758_v0 }
 0x297   :  { %v310_v39 = vpop.f32.mrf.mxu1 }
 0x298   :  { %v317_v40 = vpack.c.bf16 %v310_v39, %v310_v39 }
 0x299   :  { %v1402_v41 = vpop.f32.mrf.mxu1 }
 0x29a   :  { %v324_v42 = vsel %vm126_vm1, %v317_v40, 0 }
 0x29b   :  { %v313_v43 = vpop.f32.mrf.mxu1  ;;  %1405 = vmatpush3.bf16.msra.mxu0 %v324_v42 }
 0x29c   :  { %v318_v44 = vpack.c.bf16 %v313_v43, %v313_v43  ;;  %1416 = vmatprep.subr.bf16.mxu0 %v1758_v0 }
 0x29d   :  { %v1403_v45 = vpop.f32.mrf.mxu1 }
 0x29e   :  { %v367_v46 = vsel %vm126_vm1, %v318_v44, 0  ;;  %1407 = vmatmul.mubr.msk.bf16.vlgmr.msra.gmra.mxu0 %vm122_vm2, %v119_v12 }
 0x29f   :  { %1411 = vmatpush3.bf16.msra.mxu1 %v367_v46  ;;  %1417 = vmatpush3.bf16.msra.mxu0 %v1858_v5 }
 0x2a0   :  { %1418 = vmatprep.mubr.msk.bf16.mxu0 %vm1759_vm0, %v1758_v0  ;;  %1422 = vmatprep.subr.bf16.mxu1 %v1758_v0 }
 0x2a1   :  { %1428 = vmatprep.subr.bf16.mxu0 %v1758_v0 }
 0x2a2   :  { %1413 = vmatmul.mubr.msk.bf16.vlgmr.msra.gmra.mxu1 %vm122_vm2, %v120_v18 }
 0x2a3   :  { %1424 = vmatprep.mubr.msk.bf16.mxu1 %vm1759_vm0, %v1758_v0 }
 0x2a6   :  { %1419 = vmatmul.mubr.msk.bf16.vlgmr.msra.gmra.mxu0 %vm122_vm2, %v415_v49 }
 0x2a7   :  { %1430 = vmatprep.mubr.msk.bf16.mxu0 %vm1759_vm0, %v1758_v0 }
 0x35e   :  { %v360_v50 = vpop.f32.mrf.mxu0 }
 0x360   :  { %v1408_v51 = vpop.f32.mrf.mxu0 }
 0x362   :  { %v363_v52 = vpop.f32.mrf.mxu0  ;;  %v403_v53 = vpop.f32.mrf.mxu1 }
 0x363   :  { %v1929_v28 = vadd.f32 %v1313_v20, %v403_v53 }
 0x364   :  { %v1409_v54 = vpop.f32.mrf.mxu0  ;;  %v1414_v55 = vpop.f32.mrf.mxu1 }
 0x365   :  { %v694_v33 = vpack.c.bf16 %v1929_v28, %v1929_v28  ;;  %v1019_v39 = vsel %vm695_vm4, %v1929_v28, 0.0 }
 0x366   :  { %v453_v56 = vpop.f32.mrf.mxu0  ;;  %v406_v58 = vpop.f32.mrf.mxu1  ;;  %v1020_v41 = vrot.slane %v1019_v39, 4 }
 0x367   :  { %v460_v59 = vpack.c.bf16 %v453_v56, %v453_v56  ;;  %v740_v36 = vsel %vm695_vm4, %v694_v33, 0 }
 0x368   :  { %v1420_v60 = vpop.f32.mrf.mxu0  ;;  %v1415_v61 = vpop.f32.mrf.mxu1  ;;  %v1021_v48 = vadd.f32 %v1020_v41, %v1019_v39 }
 0x369   :  { %v466_v62 = vsel %vm126_vm1, %v460_v59, 0 }
 0x36a   :  { %v456_v1 = vpop.f32.mrf.mxu0  ;;  %1423 = vmatpush3.bf16.msra.mxu1 %v466_v62  ;;  %v1022_v60 = vrot.slane %v1021_v48, 2 }
 0x36b   :  { %v461_v3 = vpack.c.bf16 %v456_v1, %v456_v1  ;;  %1434 = vmatprep.subr.bf16.mxu1 %v1758_v0 }
 0x36c   :  { %v1421_v4 = vpop.f32.mrf.mxu0 }
 0x36d   :  { %v512_v5 = vsel %vm126_vm1, %v461_v3, 0  ;;  %1425 = vmatmul.mubr.msk.bf16.vlgmr.msra.gmra.mxu1 %vm122_vm2, %v413_v63 }
 0x36e   :  { %1429 = vmatpush3.bf16.msra.mxu0 %v512_v5  ;;  %1435 = vmatpush3.bf16.msra.mxu1 %v1875_v21  ;;  %v1924_v21 = vadd.f32 %v1313_v20, %v360_v50 }
 0x36f   :  { %1436 = vmatprep.subr.bf16.mxu1 %v1758_v0  ;;  %1438 = vmatprep.mubr.msk.bf16.mxu1 %vm1759_vm0, %v1758_v0 }
 0x370   :  { %1442 = vmatprep.subr.bf16.mxu0 %v1758_v0  ;;  %v796_v38 = vpack.c.bf16 %v1929_v28, %v1924_v21  ;;  %v1012_v40 = vsel %vm695_vm4, %v1924_v21, 0.0 }
 0x371   :  { %1431 = vmatmul.mubr.msk.bf16.vlgmr.msra.gmra.mxu0 %vm122_vm2, %v414_v6  ;;  %v1013_v44 = vrot.slane %v1012_v40, 4 }
 0x372   :  { %1437 = vmatpush3.bf16.msra.mxu1 %v1879_v24  ;;  %1444 = vmatprep.mubr.msk.bf16.mxu0 %vm1759_vm0, %v1758_v0 }
 0x373   :  { %1448 = vmatprep.subr.bf16.mxu1 %v1758_v0  ;;  %v1014_v54 = vadd.f32 %v1013_v44, %v1012_v40 }
 0x375   :  { %v1015_v4 = vrot.slane %v1014_v54, 2 }
 0x42d   :  { %v502_v7 = vpop.f32.mrf.mxu1 }
 0x42e   :  { %v503_v8 = vadd.f32 %v1883_v25, %v502_v7 }
 0x42f   :  { %v1426_v9 = vpop.f32.mrf.mxu1 }
 0x430   :  { %v554_v12 = vmax.f32 %v503_v8, 0.0 }
 0x431   :  { %v505_v10 = vpop.f32.mrf.mxu1  ;;  %v548_v11 = vpop.f32.mrf.mxu0 }
 0x432   :  { %v549_v13 = vadd.f32 %v1883_v25, %v548_v11  ;;  %v693_v25 = vpack.c.bf16 %v1924_v21, %v1924_v21  ;;  %v1023_v10 = vadd.f32 %v1022_v60, %v1021_v48 }
 0x433   :  { %v1427_v14 = vpop.f32.mrf.mxu1  ;;  %v1432_v15 = vpop.f32.mrf.mxu0 }
 0x434   :  { %v555_v16 = vmax.f32 %v549_v13, 0.0  ;;  %v697_v32 = vsel %vm695_vm4, %v693_v25, 0  ;;  %v1016_v15 = vadd.f32 %v1015_v4, %v1014_v54 }
 0x435   :  { %v551_v17 = vpop.f32.mrf.mxu0 }
 0x436   :  { %v556_v18 = vpack.c.bf16 %v555_v16, %v554_v12  ;;  %v1017_v35 = vrot.slane %v1016_v15, 1 }
 0x437   :  { %v1433_v19 = vpop.f32.mrf.mxu0 }
 0x438   :  { %1439 = vmatmul.mubr.msk.bf16.vlgmr.msra.gmra.mxu1 %vm272_vm3, %v556_v18  ;;  %v1981_v19 = vld [vmem:[#allocation10 + $0x3a] ss:$0 sm:$0xff] }
 0x439   :  { %1450 = vmatprep.mubr.msk.bf16.mxu1 %vm1759_vm0, %v1758_v0 }
 0x4f8   :  { %v594_v22 = vpop.f32.mrf.mxu1 }
 0x4f9   :  { %v601_v23 = vpack.c.bf16 %v594_v22, %v594_v22 }
 0x4fa   :  { %v1440_v24 = vpop.f32.mrf.mxu1 }
 0x4fb   :  { %v604_v26 = vsel %vm126_vm1, %v601_v23, 0  ;;  %v111_v23 = vld [vmem:[#allocation10 + $0x53] sm:$0xff] }
 0x4fc   :  { %v597_v27 = vpop.f32.mrf.mxu1  ;;  %1443 = vmatpush3.bf16.msra.mxu0 %v604_v26 }
 0x4fd   :  { %v602_v29 = vpack.c.bf16 %v597_v27, %v597_v27  ;;  %1454 = vmatprep.subr.bf16.mxu0 %v1758_v0  ;;  %v1024_v27 = vrot.slane %v1023_v10, 1 }
 0x4fe   :  { %v1441_v30 = vpop.f32.mrf.mxu1 }
 0x4ff   :  { %v647_v31 = vsel %vm126_vm1, %v602_v29, 0  ;;  %1445 = vmatmul.mubr.msk.bf16.vlgmr.msra.gmra.mxu0 %vm122_vm2, %v413_v63  ;;  %v110_v30 = vld [vmem:[#allocation10 + $0x4b] sm:$0xff]  ;;  %v1025_v40 = vadd.f32 %v1024_v27, %v1023_v10 }
 0x500   :  { %1449 = vmatpush3.bf16.msra.mxu1 %v647_v31  ;;  %1455 = vmatpush3.bf16.xpose.msra.mxu0 %v697_v32 }
 0x501   :  { %1460 = vmatprep.subr.bf16.mxu1 %v1758_v0  ;;  %1456 = vmatprep.mubr.msk.bf16.mxu0 %vm1759_vm0, %v1758_v0  ;;  %v1028_v48 = vmul.f32 0.125, %v1025_v40 }
 0x502   :  { %1466 = vmatprep.subr.bf16.mxu0 %v1758_v0 }
 0x503   :  { %1451 = vmatmul.mubr.msk.bf16.vlgmr.msra.gmra.mxu1 %vm122_vm2, %v414_v6 }
 0x504   :  { %1461 = vmatpush3.bf16.xpose.msra.mxu1 %v740_v36  ;;  %1462 = vmatprep.mubr.msk.bf16.mxu1 %vm1759_vm0, %v1758_v0 }
 0x505   :  { %1472 = vmatprep.subr.bf16.mxu1 %v1758_v0 }
 0x507   :  { %1457 = vmatmul.mubr.msk.bf16.vlgmr.msra.gmra.mxu0 %vm695_vm4, %v693_v25 }
 0x508   :  { %1467 = vmatpush3.bf16.msra.mxu0 %v691_v37  ;;  %1468 = vmatprep.mubr.msk.bf16.mxu0 %vm1759_vm0, %v1758_v0 }
 0x509   :  { %1478 = vmatprep.subr.bf16.mxu0 %v1758_v0 }
 0x50b   :  { %1463 = vmatmul.mubr.msk.bf16.vlgmr.msra.gmra.mxu1 %vm695_vm4, %v694_v33 }
 0x50c   :  { %1474 = vmatprep.mubr.msk.bf16.mxu1 %vm1759_vm0, %v1758_v0 }
 0x50f   :  { %1469 = vmatmul.mubr.msk.bf16.vlgmr.msra.gmra.mxu0 %vm695_vm4, %v796_v38 }
 0x510   :  { %1480 = vmatprep.mubr.msk.bf16.mxu0 %vm1759_vm0, %v1758_v0 }
 0x5bf   :  { %v640_v42 = vpop.f32.mrf.mxu0 }
 0x5c0   :  { %v1962_v43 = vadd.f32 %v1313_v20, %v640_v42  ;;  %v108_v42 = vld [vmem:[#allocation10 + $0x3b] sm:$0xff] }
 0x5c1   :  { %v1446_v45 = vpop.f32.mrf.mxu0 }
 0x5c2   :  { %v1029_v46 = vsel %vm695_vm4, %v1962_v43, 0.0  ;;  %v849_v47 = vpack.c.bf16 %v1962_v43, %v1962_v43 }
 0x5c3   :  { %v1030_v49 = vrot.slane %v1029_v46, 4  ;;  %v643_v50 = vpop.f32.mrf.mxu0  ;;  %v683_v51 = vpop.f32.mrf.mxu1 }
 0x5c4   :  { %v1968_v52 = vadd.f32 %v1313_v20, %v683_v51  ;;  %v852_v53 = vsel %vm695_vm4, %v849_v47, 0 }
 0x5c5   :  { %v1031_v55 = vadd.f32 %v1030_v49, %v1029_v46  ;;  %v1447_v56 = vpop.f32.mrf.mxu0  ;;  %v1452_v57 = vpop.f32.mrf.mxu1  ;;  %1473 = vmatpush3.bf16.xpose.msra.mxu1 %v852_v53  ;;  %v1018_v46 = vadd.f32 %v1017_v35, %v1016_v15 }
 0x5c6   :  { %v1036_v58 = vsel %vm695_vm4, %v1968_v52, 0.0  ;;  %1004 = vrot.lane.b32.xlu1 %v1968_v52, %s1760_s2  ;;  %v850_v59 = vpack.c.bf16 %v1968_v52, %v1968_v52  ;;  %1484 = vmatprep.subr.bf16.mxu1 %v1758_v0  ;;  %v951_v36 = vpack.c.bf16 %v1968_v52, %v1962_v43 }
 0x5c7   :  { %v1032_v61 = vrot.slane %v1031_v55, 2  ;;  %v1037_v62 = vrot.slane %v1036_v58, 4  ;;  %v686_v63 = vpop.f32.mrf.mxu1  ;;  %v733_v1 = vpop.f32.mrf.mxu0  ;;  %v1027_v50 = vmul.f32 0.125, %v1018_v46 }
 0x5c8   :  { %v782_v2 = vsub.f32 0.0, %v733_v1  ;;  %v895_v3 = vsel %vm695_vm4, %v850_v59, 0 }
 0x5c9   :  { %v1033_v5 = vadd.f32 %v1032_v61, %v1031_v55  ;;  %v1038_v6 = vadd.f32 %v1037_v62, %v1036_v58  ;;  %v1453_v7 = vpop.f32.mrf.mxu1  ;;  %v1458_v8 = vpop.f32.mrf.mxu0  ;;  %1479 = vmatpush3.bf16.xpose.msra.mxu0 %v895_v3  ;;  %v1123_v52 = vsel %vm1047_vm5, %v1028_v48, %v1027_v50 }
 0x5ca   :  { %v784_v9 = vmul.f32 1.442695, %v782_v2  ;;  %1490 = vmatprep.subr.mxu0 %v1758_v0 }
 0x5cb   :  { %v1039_v11 = vrot.slane %v1038_v6, 2  ;;  %v736_v12 = vpop.f32.mrf.mxu0  ;;  %v776_v13 = vpop.f32.mrf.mxu1  ;;  %v1034_v20 = vrot.slane %v1033_v5, 1 }
 0x5cc   :  { %1519 = vpow2.f32 %v784_v9  ;;  %v783_v14 = vsub.f32 0.0, %v776_v13  ;;  %1475 = vmatmul.mubr.msk.bf16.vlgmr.msra.gmra.mxu1 %vm695_vm4, %v849_v47 }
 0x5cd   :  { %v1040_v16 = vadd.f32 %v1039_v11, %v1038_v6  ;;  %v1459_v17 = vpop.f32.mrf.mxu0  ;;  %v1464_v18 = vpop.f32.mrf.mxu1  ;;  %1485 = vmatpush3.bf16.msra.mxu1 %v691_v37  ;;  %1486 = vmatprep.mubr.msk.bf16.mxu1 %vm1759_vm0, %v1758_v0  ;;  %v1035_v33 = vadd.f32 %v1034_v20, %v1033_v5  ;;  %v109_v37 = vld [vmem:[#allocation10 + $0x43] sm:$0xff] }
 0x5ce   :  { %v786_v22 = vmul.f32 1.442695, %v783_v14  ;;  %1497 = vmatprep.subr.mxu1 %v1758_v0  ;;  %v1331_v14 = vld [vmem:[#allocation10 + $0x5b] ss:$0 sm:$0xff] }
 0x5cf   :  { %v779_v24 = vpop.f32.mrf.mxu1  ;;  %v834_v26 = vpop.f32.mrf.mxu0  ;;  %v1041_v25 = vrot.slane %v1040_v16, 1  ;;  %v1043_v45 = vmul.f32 0.125, %v1035_v33 }
 0x5d0   :  { %1521 = vpow2.f32 %v786_v22  ;;  %v845_v29 = vadd.f32 %v1981_v19, %v834_v26  ;;  %1481 = vmatmul.mubr.msk.bf16.vlgmr.msra.gmra.mxu0 %vm695_vm4, %v850_v59 }
 0x5d1   :  { %v1465_v31 = vpop.f32.mrf.mxu1  ;;  %v1470_v32 = vpop.f32.mrf.mxu0  ;;  %1491 = vmatpush3.msra.mxu0 %v111_v23  ;;  %1494 = vmatprep.mubr.msk.f32.mxu0 %vm1759_vm0, %v1758_v0  ;;  %v1042_v34 = vadd.f32 %v1041_v25, %v1040_v16  ;;  %v1332_v23 = vld [vmem:[#allocation10 + $0x5c] ss:$0 sm:$0xff] }
 0x5d2   :  { %847 = vst.msk [vmem:[#allocation11] sm:$0xff] %vm122_vm2, %v845_v29  ;;  %1492 = vmatprep.subr.mxu0 %v1758_v0 }
 0x5d3   :  { %v837_v38 = vpop.f32.mrf.mxu0  ;;  %1493 = vmatpush3.msra.mxu0 %v110_v30  ;;  %v1044_v39 = vmul.f32 0.125, %v1042_v34 }
 0x5d4   :  { %v846_v41 = vadd.f32 %v1981_v19, %v837_v38  ;;  %1487 = vmatmul.mubr.msk.bf16.vlgmr.msra.gmra.mxu1 %vm695_vm4, %v951_v36 }
 0x5d5   :  { %v1471_v44 = vpop.f32.mrf.mxu0  ;;  %1498 = vmatpush3.msra.mxu1 %v109_v37  ;;  %1501 = vmatprep.mubr.msk.f32.mxu1 %vm1759_vm0, %v1758_v0  ;;  %v1048_v47 = vsel %vm1047_vm5, %v1044_v39, %v1043_v45 }
 0x5d6   :  { %848 = vst.msk [vmem:[#allocation11 + $0x8] sm:$0xff] %vm122_vm2, %v846_v41  ;;  %1499 = vmatprep.subr.mxu1 %v1758_v0 }
 0x5d7   :  { %1500 = vmatpush3.msra.mxu1 %v108_v42 }
 0x5d8   :  { %1495 = vmatmul.mubr.msk.f32.vlgmr.msra.gmra.mxu0 %vm695_vm4, %v1048_v47 }
 0x5d9   :  { %v1520_v49 = vpop.eup %1519 }
 0x5da   :  { %v788_v51 = vadd.f32 1.0, %v1520_v49 }
 0x5dc   :  { %1523 = vrcp.f32 %v788_v51  ;;  %1502 = vmatmul.mubr.msk.f32.vlgmr.msra.gmra.mxu1 %vm695_vm4, %v1123_v52 }
 0x5dd   :  { %v1522_v53 = vpop.eup %1521 }
 0x5de   :  { %v789_v54 = vadd.f32 1.0, %v1522_v53 }
 0x5e0   :  { %1525 = vrcp.f32 %v789_v54 }
 0x5e9   :  { %v1524_v55 = vpop.eup %1523 }
 0x5ea   :  { %794 = vst.msk [vmem:[#allocation14] sm:$0xff] %vm122_vm2, %v1524_v55 }
 0x5ed   :  { %v1526_v56 = vpop.eup %1525 }
 0x5ee   :  { %795 = vst.msk [vmem:[#allocation14 + $0x8] sm:$0xff] %vm122_vm2, %v1526_v56 }
 0x638   :  { %v1005_v0 = vpop.permute.xlu1 %1004 }
 0x639   :  { %v1009_v57 = vsel %vm695_vm4, %v1929_v28, %v1005_v0 }
 0x63a   :  { %1011 = vst.msk [vmem:[#allocation17 + $0x8] sm:$0xff] %vm272_vm3, %v1009_v57 }
 0x68c   :  { %v888_v58 = vpop.f32.mrf.mxu1 }
 0x68d   :  { %v937_v59 = vsub.f32 0.0, %v888_v58 }
 0x68e   :  { %v1476_v60 = vpop.f32.mrf.mxu1 }
 0x68f   :  { %v939_v61 = vmul.f32 1.442695, %v937_v59 }
 0x690   :  { %v891_v62 = vpop.f32.mrf.mxu1  ;;  %v931_v63 = vpop.f32.mrf.mxu0 }
 0x691   :  { %1527 = vpow2.f32 %v939_v61  ;;  %v938_v1 = vsub.f32 0.0, %v931_v63 }
 0x692   :  { %v1477_v2 = vpop.f32.mrf.mxu1  ;;  %v1482_v3 = vpop.f32.mrf.mxu0 }
 0x693   :  { %v941_v4 = vmul.f32 1.442695, %v938_v1 }
 0x694   :  { %v934_v5 = vpop.f32.mrf.mxu0  ;;  %v989_v6 = vpop.f32.mrf.mxu1 }
 0x695   :  { %1529 = vpow2.f32 %v941_v4  ;;  %v996_v7 = vadd.f32 %v1981_v19, %v989_v6 }
 0x696   :  { %v1483_v8 = vpop.f32.mrf.mxu0  ;;  %v1488_v28 = vpop.f32.mrf.mxu1 }
 0x697   :  { %998 = vst.msk [vmem:[#allocation12] sm:$0xff] %vm122_vm2, %v996_v7 }
 0x698   :  { %v992_v9 = vpop.f32.mrf.mxu1  ;;  %v1117_v10 = vpop.f32.mrf.mxu0 }
 0x699   :  { %v997_v11 = vadd.f32 %v1981_v19, %v992_v9 }
 0x69a   :  { %v1489_v12 = vpop.f32.mrf.mxu1  ;;  %v1496_v13 = vpop.f32.mrf.mxu0 }
 0x69b   :  { %999 = vst.msk [vmem:[#allocation12 + $0x8] sm:$0xff] %vm122_vm2, %v997_v11 }
 0x69c   :  { %v1192_v15 = vpop.f32.mrf.mxu1 }
 0x69d   :  { %v1193_v16 = vadd.f32 %v1192_v15, %v1117_v10 }
 0x69e   :  { %v1528_v17 = vpop.eup %1527  ;;  %v1503_v18 = vpop.f32.mrf.mxu1 }
 0x69f   :  { %v943_v20 = vadd.f32 1.0, %v1528_v17  ;;  %v1200_v22 = vadd.f32 %v1331_v14, %v1193_v16 }
 0x6a1   :  { %1531 = vrcp.f32 %v943_v20  ;;  %v1201_v24 = vmax.f32 %v1200_v22, 0.0 }
 0x6a2   :  { %v1530_v26 = vpop.eup %1529 }
 0x6a3   :  { %v944_v25 = vadd.f32 1.0, %v1530_v26  ;;  %v1206_v27 = vmul.f32 %v1332_v23, %v1201_v24 }
 0x6a5   :  { %1533 = vrcp.f32 %v944_v25  ;;  %v1208_v19 = vsel %vm1207_vm6, %v1206_v27, 0.0 }
 0x6a6   :  { %1209 = vadd.xlane.f32.xlu0 %v1208_v19 }
 0x6ae   :  { %v1532_v29 = vpop.eup %1531 }
 0x6af   :  { %949 = vst.msk [vmem:[#allocation15] sm:$0xff] %vm122_vm2, %v1532_v29 }
 0x6b2   :  { %v1534_v30 = vpop.eup %1533 }
 0x6b3   :  { %950 = vst.msk [vmem:[#allocation15 + $0x8] sm:$0xff] %vm122_vm2, %v1534_v30 }
 0x6bc   :  { %1002 = vrot.lane.b32.xlu0 %v1962_v43, %s1760_s2 }
 0x6bd   :  { %1650 = shalt.err (!%p1647_p1)
}
 0x6be   :  { %1246 = dma.vmem_to_hbm [thread:$0]  %s1241_s17, 256, %s2057_s6, [#allocation13], %s1753_s18, %s1753_s18, %s1754_s19  }
 0x6bf   :  { %s1659_s25 = scalar_lea.vmem %s1265_s21, 256  ;;  %p1664_p3 = scmp.lt.s32.totalorder %s1265_s21, %s1265_s21 }
 0x6c0   :  { %p1660_p2 = scmp.ne.s32.totalorder %s1265_s21, %s1659_s25  ;;  %p1665_p4 = scmp.lt.s32.totalorder %s1659_s25, %s1659_s25 }
 0x6c2   :  { %p1666_p5 = por %p1665_p4, %p1664_p3 }
 0x6c4   :  { %p1667_p6 = pnand %p1666_p5, %p1660_p2 }
 0x6c6   :  { %1670 = shalt.err (!%p1667_p6)
}
 0x6c7   :  { %1270 = dma.vmem_to_hbm [thread:$0]  %s1265_s21, 256, %s2059_s8, [#allocation16], %s1753_s18, %s1753_s18, %s1754_s19  }
 0x6c8   :  { %s1763_s28 = smov [#allocation11]   ;;  %s1764_s29 = smov [#allocation14]  }
 0x6c9   :  { %s1228_s1 = sshll.u32 %s1763_s28, 4  ;;  %s1252_s30 = sshll.u32 %s1764_s29, 4  ;;  %s1229_s1 = int_to_ptr.vmem [resolvable:$true] %s1228_s1  ;;  %s1253_s30 = int_to_ptr.vmem [resolvable:$true] %s1252_s30 }
 0x6ca   :  { %s1679_s6 = scalar_lea.vmem %s1229_s1, 256  ;;  %p1684_p8 = scmp.lt.s32.totalorder %s1229_s1, %s1229_s1 }
 0x6cb   :  { %p1680_p7 = scmp.ne.s32.totalorder %s1229_s1, %s1679_s6  ;;  %p1685_p9 = scmp.lt.s32.totalorder %s1679_s6, %s1679_s6 }
 0x6cd   :  { %p1686_p10 = por %p1685_p9, %p1684_p8 }
 0x6cf   :  { %p1687_p11 = pnand %p1686_p10, %p1680_p7 }
 0x6d1   :  { %1690 = shalt.err (!%p1687_p11)
}
 0x6d2   :  { %1234 = dma.vmem_to_hbm [thread:$0]  %s1229_s1, 256, %s2056_s5, [#allocation4], %s1753_s18, %s1753_s18, %s1754_s19  }
 0x6d3   :  { %s1699_s8 = scalar_lea.vmem %s1253_s30, 256  ;;  %p1704_p13 = scmp.lt.s32.totalorder %s1253_s30, %s1253_s30 }
 0x6d4   :  { %p1700_p12 = scmp.ne.s32.totalorder %s1253_s30, %s1699_s8  ;;  %p1705_p0 = scmp.lt.s32.totalorder %s1699_s8, %s1699_s8 }
 0x6d6   :  { %p1706_p1 = por %p1705_p0, %p1704_p13 }
 0x6d8   :  { %p1707_p2 = pnand %p1706_p1, %p1700_p12 }
 0x6da   :  { %1710 = shalt.err (!%p1707_p2)
}
 0x6db   :  { %1258 = dma.vmem_to_hbm [thread:$0]  %s1253_s30, 256, %s2058_s7, [#allocation13], %s1753_s18, %s1753_s18, %s1754_s19   ;;  %v1333_v43 = vld [vmem:[#allocation10 + $0x5d] ss:$0 sm:$0xff] }
 0x6dc   :  { %s1765_s14 = smov [#allocation17]  }
 0x6dd   :  { %s1276_s15 = sshll.u32 %s1765_s14, 4  ;;  %s1277_s15 = int_to_ptr.vmem [resolvable:$true] %s1276_s15 }
 0x6de   :  { %s1719_s5 = scalar_lea.vmem %s1277_s15, 256  ;;  %p1724_p4 = scmp.lt.s32.totalorder %s1277_s15, %s1277_s15 }
 0x6df   :  { %p1720_p3 = scmp.ne.s32.totalorder %s1277_s15, %s1719_s5  ;;  %p1725_p5 = scmp.lt.s32.totalorder %s1719_s5, %s1719_s5 }
 0x6e1   :  { %p1726_p6 = por %p1725_p5, %p1724_p4 }
 0x6e3   :  { %p1727_p7 = pnand %p1726_p6, %p1720_p3 }
 0x72f   :  { %v1210_v31 = vpop.xlane.xlu0 %1209 }
 0x730   :  { %v1215_v32 = vadd.f32 %v1333_v43, %v1210_v31 }
 0x732   :  { %v1216_v33 = vsub.f32 0.0, %v1215_v32 }
 0x733   :  { %v1003_v34 = vpop.permute.xlu0 %1002 }
 0x734   :  { %v1217_v35 = vmul.f32 1.442695, %v1216_v33  ;;  %v1008_v36 = vsel %vm695_vm4, %v1924_v21, %v1003_v34 }
 0x735   :  { %1010 = vst.msk [vmem:[#allocation17] sm:$0xff] %vm272_vm3, %v1008_v36 }
 0x736   :  { %1535 = vpow2.f32 %v1217_v35 }
 0x737   :  { %1730 = shalt.err (!%p1727_p7)
}
 0x738   :  { %1282 = dma.vmem_to_hbm [thread:$0]  %s1277_s15, 256, %s2060_s9, [#allocation16], %s1753_s18, %s1753_s18, %s1754_s19   ;;  %vm1221_vm7 = vcmask 1024  }
 0x743   :  { %v1536_v37 = vpop.eup %1535 }
 0x744   :  { %v1219_v38 = vadd.f32 1.0, %v1536_v37 }
 0x746   :  { %1537 = vrcp.f32 %v1219_v38 }
 0x753   :  { %v1538_v21 = vpop.eup %1537 }
 0x754   :  { %1222 = vst.msk [vmem:[%s2061_s10] sm:$0x3] %vm1221_vm7, %v1538_v21 }
 0x755   :  { %1745 = dma.done.wait [#allocation4], 256  }
 0x756   :  { %1746 = vsyncadd [#allocation4], 4294967040 }
 0x757   :  { %1747 = dma.done.wait [#allocation13], 512  }
 0x758   :  { %1748 = vsyncadd [#allocation13], 4294966784 }
 0x759   :  { %1749 = dma.done.wait [#allocation16], 512  }
 0x75a   :  { %1750 = vsyncadd [#allocation16], 4294966784 }
 0x75b   :  { %1302 = vsyncpa [#allocation3], 1 }
 0x75c   :  { %1303 = vsyncpa [#allocation6], 1 }
 0x75d   :  { %1304 = vsyncpa [#allocation9], 1 }
 0x75e   :  { %1305 = vsyncpa [#allocation4], 1 }
 0x75f   :  { %1306 = vsyncpa [#allocation13], 1 }
 0x760   :  { %1307 = vsyncpa [#allocation16], 1 }

</bundles_post_ra>
